<compile_context>
chip_gen: v7x
topology: tpu7x:2x2x1
jax: 0.10.0
libtpu: 0.0.40
codegen_flags: <defaults>
</compile_context>

<pallas_src>
import math
import functools

import jax
import jax.numpy as jnp
from jax.experimental import pallas as pl
from jax.experimental.pallas import tpu as pltpu


def _round_up(a: int, b: int) -> int:
    return (a + b - 1) // b * b


# ----------------------------------------------------------------------------
# Kernel 1: K / V projection over the senders (computed once, not per row tile)
# ----------------------------------------------------------------------------
def _kv_proj_kernel(y_ref, wk_t_ref, bk_ref, wv_t_ref, bv_ref, k_ref, v_ref):
    yb = y_ref[...]                                                  # (tkv, K) bf16
    k = jnp.dot(yb, wk_t_ref[...], preferred_element_type=jnp.float32) + bk_ref[...]
    v = jnp.dot(yb, wv_t_ref[...], preferred_element_type=jnp.float32) + bv_ref[...]
    k_ref[...] = k.astype(k_ref.dtype)                               # bf16
    v_ref[...] = v.astype(v_ref.dtype)


# ----------------------------------------------------------------------------
# Kernel 2: fused Q-projection -> flash (online-softmax) cross attention over
# M blocks -> head concat -> aggregate linear -> residual -> LayerNorm(1e-12)
# ----------------------------------------------------------------------------
def _cross_attn_flash_kernel(
    x_ref, bias_ref, k_ref, v_ref,
    wq_t_ref, bq_ref, wa_t_ref, ba_ref, lnw_ref, lnb_ref,
    out_ref,
    q_sc, m_sc, l_sc, acc_sc,
    *, num_heads: int, sub: int,
):
    j = pl.program_id(1)                          # M-block index (reduction axis)

    @pl.when(j == 0)
    def _init():
        # Q projection once per row tile; 1/sqrt(d) already folded into wq_t/bq.
        xb = x_ref[...].astype(jnp.bfloat16)
        q = jnp.dot(xb, wq_t_ref[...], preferred_element_type=jnp.float32) + bq_ref[...]
        q_sc[...] = q.astype(jnp.bfloat16)
        m_sc[...] = jnp.full_like(m_sc, -jnp.inf)
        l_sc[...] = jnp.zeros_like(l_sc)
        acc_sc[...] = jnp.zeros_like(acc_sc)

    bias = bias_ref[...].astype(jnp.float32)      # (tn, tm) additive mask (0 / -1e9)
    kb = k_ref[...]                               # (tm, K) bf16
    vb = v_ref[...]                               # (tm, K) bf16

    for h in range(num_heads):                    # static unroll over heads
        sl = slice(h * sub, (h + 1) * sub)
        # Q @ K^T with the transpose folded into the contraction (no kh.T copy).
        s = jax.lax.dot_general(
            q_sc[:, sl], kb[:, sl],
            dimension_numbers=(((1,), (1,)), ((), ())),
            preferred_element_type=jnp.float32,
        ) + bias                                  # (tn, tm)

        m_prev = m_sc[:, h:h + 1]                 # (tn, 1)
        m_new = jnp.maximum(m_prev, jnp.max(s, axis=-1, keepdims=True))
        alpha = jnp.exp(m_prev - m_new)
        p = jnp.exp(s - m_new)
        l_sc[:, h:h + 1] = alpha * l_sc[:, h:h + 1] + jnp.sum(p, axis=-1, keepdims=True)
        acc_sc[:, sl] = alpha * acc_sc[:, sl] + jnp.dot(
            p.astype(jnp.bfloat16), vb[:, sl], preferred_element_type=jnp.float32)
        m_sc[:, h:h + 1] = m_new
        # attention dropout is identity in eval mode

    @pl.when(j == pl.num_programs(1) - 1)
    def _finalize():
        # Normalize each head's accumulator (EUP reciprocal) in place.
        for h in range(num_heads):
            sl = slice(h * sub, (h + 1) * sub)
            acc_sc[:, sl] = acc_sc[:, sl] * pl.reciprocal(l_sc[:, h:h + 1], approx=True)
        m_cat = acc_sc[...].astype(jnp.bfloat16)  # (tn, K) == permute+view in torch

        # SelfAttentionOutput: aggregate linear + (identity dropout) + residual + LN.
        agg = jnp.dot(m_cat, wa_t_ref[...], preferred_element_type=jnp.float32) + ba_ref[...]
        h_sum = x_ref[...] + agg                  # residual in f32
        mean = jnp.mean(h_sum, axis=-1, keepdims=True)
        var = jnp.mean((h_sum - mean) ** 2, axis=-1, keepdims=True)   # biased, like torch LN
        normed = (h_sum - mean) * jax.lax.rsqrt(var + 1e-12)          # EUP rsqrt
        out_ref[...] = (normed * lnw_ref[...] + lnb_ref[...]).astype(out_ref.dtype)


def _vmem_budget_bytes(tn: int, tm: int, K: int, H: int) -> int:
    """Explicit VMEM budget for the attention call (double-buffered tiles +
    resident weights + scratch), with slack for compiler-internal scratch."""
    def padded(r, c, bpe):
        return _round_up(r, 8) * _round_up(c, 128) * bpe
    b = 0
    b += 2 * padded(tn, K, 4)        # x row tile (double-buffered, f32)
    b += 2 * padded(tn, tm, 2)       # bias tiles (bf16)
    b += 2 * 2 * padded(tm, K, 2)    # K and V blocks (bf16, double-buffered)
    b += 2 * padded(tn, K, 4)        # output tile (double-buffered, f32)
    b += 2 * padded(K, K, 2)         # wq_t, wa_t (resident, bf16)
    b += 6 * padded(1, K, 4)         # bq, ba, ln_w, ln_b (+ slack)
    b += padded(tn, K, 2)            # q scratch (bf16)
    b += padded(tn, K, 4)            # acc scratch (f32)
    b += 2 * padded(tn, H, 4)        # running max / denom scratch
    return min(max(2 * b + (4 << 20), 32 << 20), 96 << 20)


def cross_attention_layer(x, y, attn_mask, params, *, num_heads: int,
                          block_n: int = 128, block_m: int = 512):
    """Fused CrossAttentionLayer forward (eval mode).

    x: (N, K) receiving-node embeddings
    y: (M, K) sending-node embeddings
    attn_mask: (N, M) binary mask or None. (The PyTorch docstring's (1, M, N) is
        a doc bug: broadcasting against the (H, N, M) weights requires (N, M).)
    Returns (out, None) matching the PyTorch module (return_weights=False).
    """
    N, K = x.shape
    M, _ = y.shape
    assert K % num_heads == 0
    sub = K // num_heads
    inv_sqrt_d = 1.0 / math.sqrt(sub)
    f32, bf16 = jnp.float32, jnp.bfloat16

    # --- tile / padding geometry -------------------------------------------
    if N > block_n:
        tn = _round_up(block_n, 16)
    else:
        # Small N: force (up to) two row tiles so the "parallel" row axis can
        # shard across v7x's two TensorCores (cheap extra step on v5e/v6e).
        tn = _round_up(max(-(-N // 2), 16), 16)
    Np = _round_up(N, tn)
    Mp = _round_up(max(M, 128), 128)              # lane-dense score tiles
    tm = min(_round_up(block_m, 128), Mp)
    assert Mp % tm == 0

    x_p = jnp.zeros((Np, K), f32).at[:N].set(x.astype(f32))
    y_p = jnp.zeros((Mp, K), bf16).at[:M].set(y.astype(bf16))

    # Additive mask bias, streamed as bf16 (half the DMA of f32). NOTE: for a
    # row whose mask is entirely zero this yields softmax of the raw scores
    # rather than torch's uniform weights (documented degenerate-case delta).
    bias = jnp.zeros((Np, Mp), f32)
    if Mp > M:
        bias = bias.at[:, M:].set(-1e9)           # padded sender columns
    if attn_mask is not None:
        bias = bias.at[:N, :M].set(jnp.where(attn_mask == 0, -1e9, 0.0).astype(f32))
    bias = bias.astype(bf16)

    # Pre-transposed bf16 weights; fold 1/sqrt(d) into the query projection.
    wq_t = (params["wq"].astype(f32) * inv_sqrt_d).T.astype(bf16)
    bq = (params["bq"].astype(f32) * inv_sqrt_d).reshape(1, K)
    wk_t = params["wk"].astype(f32).T.astype(bf16)
    bk = params["bk"].astype(f32).reshape(1, K)
    wv_t = params["wv"].astype(f32).T.astype(bf16)
    bv = params["bv"].astype(f32).reshape(1, K)
    wa_t = params["wa"].astype(f32).T.astype(bf16)
    ba = params["ba"].astype(f32).reshape(1, K)
    lnw = params["ln_w"].astype(f32).reshape(1, K)
    lnb = params["ln_b"].astype(f32).reshape(1, K)

    # --- pass 1: K / V projection over the senders (hoisted out of row grid) --
    tkv = min(256, Mp)
    kv_cost = pl.CostEstimate(
        flops=4 * Mp * K * K,
        transcendentals=0,
        bytes_accessed=2 * Mp * K + 2 * 2 * K * K + 2 * 4 * K + 2 * 2 * Mp * K)
    k_mat, v_mat = pl.pallas_call(
        _kv_proj_kernel,
        out_shape=(jax.ShapeDtypeStruct((Mp, K), bf16),
                   jax.ShapeDtypeStruct((Mp, K), bf16)),
        grid=(Mp // tkv,),
        in_specs=[
            pl.BlockSpec((tkv, K), lambda i: (i, 0)),       # y sender block
            pl.BlockSpec((K, K), lambda i: (0, 0)),         # wk_t (resident)
            pl.BlockSpec((1, K), lambda i: (0, 0)),         # bk
            pl.BlockSpec((K, K), lambda i: (0, 0)),         # wv_t (resident)
            pl.BlockSpec((1, K), lambda i: (0, 0)),         # bv
        ],
        out_specs=(pl.BlockSpec((tkv, K), lambda i: (i, 0)),
                   pl.BlockSpec((tkv, K), lambda i: (i, 0))),
        compiler_params=pltpu.CompilerParams(dimension_semantics=("parallel",)),
        cost_estimate=kv_cost,
    )(y_p, wk_t, bk, wv_t, bv)

    # --- pass 2: fused flash attention + output block ------------------------
    kernel = functools.partial(_cross_attn_flash_kernel, num_heads=num_heads, sub=sub)

    def resident(shape):                          # same block every grid step
        return pl.BlockSpec(shape, lambda i, j: (0, 0))

    row_spec = pl.BlockSpec((tn, K), lambda i, j: (i, 0))
    grid = (Np // tn, Mp // tm)                   # M axis last (reduction axis)
    n_mblk = Mp // tm

    cost = pl.CostEstimate(
        flops=4 * Np * K * K + 4 * Np * Mp * K,
        transcendentals=num_heads * Np * (Mp + n_mblk) + (num_heads + 1) * Np,
        bytes_accessed=(4 * Np * K                      # x (f32)
                        + 2 * Np * Mp                   # bias (bf16)
                        + 2 * 2 * Mp * K * (Np // tn)   # k, v streamed per row tile
                        + 2 * 2 * K * K + 6 * 4 * K     # weights / vectors
                        + 4 * Np * K))                  # out

    out = pl.pallas_call(
        kernel,
        out_shape=jax.ShapeDtypeStruct((Np, K), f32),
        grid=grid,
        in_specs=[
            row_spec,                                        # x row tile (f32)
            pl.BlockSpec((tn, tm), lambda i, j: (i, j)),     # bf16 additive mask tile
            pl.BlockSpec((tm, K), lambda i, j: (j, 0)),      # K block (bf16)
            pl.BlockSpec((tm, K), lambda i, j: (j, 0)),      # V block (bf16)
            resident((K, K)), resident((1, K)),              # wq_t (scaled), bq
            resident((K, K)), resident((1, K)),              # wa_t, ba
            resident((1, K)), resident((1, K)),              # ln_w, ln_b
        ],
        out_specs=row_spec,
        scratch_shapes=[
            pltpu.VMEM((tn, K), bf16),                       # q (per row tile)
            pltpu.VMEM((tn, num_heads), f32),                # running max per head
            pltpu.VMEM((tn, num_heads), f32),                # running denom per head
            pltpu.VMEM((tn, K), f32),                        # output accumulator
        ],
        compiler_params=pltpu.CompilerParams(
            dimension_semantics=("parallel", "arbitrary"),
            vmem_limit_bytes=_vmem_budget_bytes(tn, tm, K, num_heads)),
        cost_estimate=cost,
    )(x_p, bias, k_mat, v_mat, wq_t, bq, wa_t, ba, lnw, lnb)

    return out[:N], None                          # attn_data None (return_weights=False)


def _reference(x, y, attn_mask, params, *, num_heads: int):
    """Pure-JAX f32 reference mirroring the PyTorch forward (eval mode)."""
    N, K = x.shape
    sub = K // num_heads
    q = x @ params["wq"].T + params["bq"]
    k = y @ params["wk"].T + params["bk"]
    v = y @ params["wv"].T + params["bv"]

    def split(t):  # (L, K) -> (H, L, d)
        return t.reshape(t.shape[0], num_heads, sub).transpose(1, 0, 2)

    qh, kh, vh = split(q), split(k), split(v)
    w = jnp.einsum("hnd,hmd->hnm", qh, kh) / math.sqrt(sub)
    if attn_mask is not None:
        w = jnp.where(attn_mask[None] == 0, -1e9, w)
    w = jax.nn.softmax(w, axis=-1)
    m = jnp.einsum("hnm,hmd->hnd", w, vh)
    m = m.transpose(1, 0, 2).reshape(N, K)

    agg = m @ params["wa"].T + params["ba"]
    h_sum = x + agg
    mean = jnp.mean(h_sum, axis=-1, keepdims=True)
    var = jnp.mean((h_sum - mean) ** 2, axis=-1, keepdims=True)
    return ((h_sum - mean) / jnp.sqrt(var + 1e-12)) * params["ln_w"] + params["ln_b"]


if __name__ == "__main__":
    # Small shapes: hidden=128 (lane-dense), 8 heads (sub=16), 24 receivers,
    # 150 senders (pads to 256 -> exercises the multi-M-block flash path).
    N, M, K, H = 24, 150, 128, 8

    key = jax.random.PRNGKey(0)
    keys = jax.random.split(key, 12)
    scale = 0.05

    params = {
        "wq": scale * jax.random.normal(keys[0], (K, K), jnp.float32),
        "bq": scale * jax.random.normal(keys[1], (K,), jnp.float32),
        "wk": scale * jax.random.normal(keys[2], (K, K), jnp.float32),
        "bk": scale * jax.random.normal(keys[3], (K,), jnp.float32),
        "wv": scale * jax.random.normal(keys[4], (K, K), jnp.float32),
        "bv": scale * jax.random.normal(keys[5], (K,), jnp.float32),
        "wa": scale * jax.random.normal(keys[6], (K, K), jnp.float32),
        "ba": scale * jax.random.normal(keys[7], (K,), jnp.float32),
        "ln_w": 1.0 + scale * jax.random.normal(keys[8], (K,), jnp.float32),
        "ln_b": scale * jax.random.normal(keys[9], (K,), jnp.float32),
    }

    x = jax.random.normal(keys[10], (N, K), jnp.float32)
    y = jax.random.normal(keys[11], (M, K), jnp.float32)
    # Asymmetric binary mask: mask out the last 7 senders for every receiver,
    # and additionally sender 0 for the first half of the receivers.
    attn_mask = jnp.ones((N, M), jnp.int32)
    attn_mask = attn_mask.at[:, M - 7:].set(0)
    attn_mask = attn_mask.at[: N // 2, 0].set(0)

    ref = _reference(x, y, attn_mask, params, num_heads=H)

    # Multi M-block path: 2 row tiles x 2 sender blocks of 128 (online softmax
    # accumulation across blocks).
    out1, attn1 = cross_attention_layer(x, y, attn_mask, params, num_heads=H, block_m=128)
    out1 = jax.block_until_ready(out1)
    # Single M-block path (default block_m covers all padded senders).
    out2, _ = cross_attention_layer(x, y, attn_mask, params, num_heads=H)
    out2 = jax.block_until_ready(out2)

    assert out1.shape == (N, K) and out2.shape == (N, K)
    assert attn1 is None
    # Tolerance accounts for bf16 matmul operands + the EUP approximate
    # reciprocal in the softmax normalization.
    assert jnp.allclose(out1, ref, atol=2e-2, rtol=2e-2), "mismatch (2 M-blocks) vs reference"
    assert jnp.allclose(out2, ref, atol=2e-2, rtol=2e-2), "mismatch (1 M-block) vs reference"
    assert jnp.allclose(out1, out2, atol=1e-2, rtol=1e-2), "M-blocking changed the result"

    print("KERNEL_OK")
</pallas_src>

<mosaic_0001>
module attributes {stable_mosaic.version = 11 : i64} {
  func.func @_kv_proj_kernel(%arg0: i32, %arg1: memref<256x128xbf16, #tpu.memory_space<vmem>>, %arg2: memref<128x128xbf16, #tpu.memory_space<vmem>>, %arg3: memref<1x128xf32, #tpu.memory_space<vmem>>, %arg4: memref<128x128xbf16, #tpu.memory_space<vmem>>, %arg5: memref<1x128xf32, #tpu.memory_space<vmem>>, %arg6: memref<256x128xbf16, #tpu.memory_space<vmem>>, %arg7: memref<256x128xbf16, #tpu.memory_space<vmem>>) attributes {dimension_semantics = [#tpu.dimension_semantics<parallel>], iteration_bounds = array<i64: 1>, scalar_prefetch = 0 : i64, scratch_operands = 0 : i64, tpu.core_type = #tpu.core_type<tc>, window_params = [{transform_indices = @transform_0, window_bounds = array<i64: 256, 128>}, {pipeline_mode = #tpu.pipeline_mode<synchronous>, transform_indices = @transform_1, window_bounds = array<i64: 128, 128>}, {pipeline_mode = #tpu.pipeline_mode<synchronous>, transform_indices = @transform_2, window_bounds = array<i64: 1, 128>}, {pipeline_mode = #tpu.pipeline_mode<synchronous>, transform_indices = @transform_3, window_bounds = array<i64: 128, 128>}, {pipeline_mode = #tpu.pipeline_mode<synchronous>, transform_indices = @transform_4, window_bounds = array<i64: 1, 128>}, {transform_indices = @transform_5, window_bounds = array<i64: 256, 128>}, {transform_indices = @transform_6, window_bounds = array<i64: 256, 128>}]} {
    %c0 = arith.constant 0 : index
    %c0_0 = arith.constant 0 : index
    %0 = vector.load %arg1[%c0, %c0_0] : memref<256x128xbf16, #tpu.memory_space<vmem>>, vector<256x128xbf16>
    %c0_1 = arith.constant 0 : index
    %c0_2 = arith.constant 0 : index
    %1 = vector.load %arg2[%c0_1, %c0_2] : memref<128x128xbf16, #tpu.memory_space<vmem>>, vector<128x128xbf16>
    %cst = arith.constant dense<0.000000e+00> : vector<256x128xf32>
    %2 = tpu.matmul %0, %1, %cst {dimension_numbers = #tpu.dot_dimension_numbers<[1], [0], [0], [1], [0, 0, 1, 1], [], []>} : vector<256x128xbf16>, vector<128x128xbf16>, vector<256x128xf32> -> vector<256x128xf32>
    %c0_3 = arith.constant 0 : index
    %c0_4 = arith.constant 0 : index
    %3 = vector.load %arg3[%c0_3, %c0_4] : memref<1x128xf32, #tpu.memory_space<vmem>>, vector<1x128xf32>
    %4 = vector.broadcast %3 : vector<1x128xf32> to vector<256x128xf32>
    %5 = arith.addf %2, %4 : vector<256x128xf32>
    %c0_5 = arith.constant 0 : index
    %c0_6 = arith.constant 0 : index
    %6 = vector.load %arg4[%c0_5, %c0_6] : memref<128x128xbf16, #tpu.memory_space<vmem>>, vector<128x128xbf16>
    %cst_7 = arith.constant dense<0.000000e+00> : vector<256x128xf32>
    %7 = tpu.matmul %0, %6, %cst_7 {dimension_numbers = #tpu.dot_dimension_numbers<[1], [0], [0], [1], [0, 0, 1, 1], [], []>} : vector<256x128xbf16>, vector<128x128xbf16>, vector<256x128xf32> -> vector<256x128xf32>
    %c0_8 = arith.constant 0 : index
    %c0_9 = arith.constant 0 : index
    %8 = vector.load %arg5[%c0_8, %c0_9] : memref<1x128xf32, #tpu.memory_space<vmem>>, vector<1x128xf32>
    %9 = vector.broadcast %8 : vector<1x128xf32> to vector<256x128xf32>
    %10 = arith.addf %7, %9 : vector<256x128xf32>
    %11 = arith.truncf %5 : vector<256x128xf32> to vector<256x128xbf16>
    %c0_10 = arith.constant 0 : index
    %c0_11 = arith.constant 0 : index
    %12 = vector.load %arg6[%c0_10, %c0_11] : memref<256x128xbf16, #tpu.memory_space<vmem>>, vector<256x128xbf16>
    tpu.vector_store %arg6[%c0_10, %c0_11], %11 {strides = array<i32>} : memref<256x128xbf16, #tpu.memory_space<vmem>>, vector<256x128xbf16>,
    %13 = arith.truncf %10 : vector<256x128xf32> to vector<256x128xbf16>
    %c0_12 = arith.constant 0 : index
    %c0_13 = arith.constant 0 : index
    %14 = vector.load %arg7[%c0_12, %c0_13] : memref<256x128xbf16, #tpu.memory_space<vmem>>, vector<256x128xbf16>
    tpu.vector_store %arg7[%c0_12, %c0_13], %13 {strides = array<i32>} : memref<256x128xbf16, #tpu.memory_space<vmem>>, vector<256x128xbf16>,
    return
  }
  func.func @transform_0(%arg0: i32) -> (i32, i32) {
    %c0_i32 = arith.constant 0 : i32
    %c0_i32_0 = arith.constant 0 : i32
    return %arg0, %c0_i32 : i32, i32
  }
  func.func @transform_1(%arg0: i32) -> (i32, i32) {
    %c0_i32 = arith.constant 0 : i32
    %c0_i32_0 = arith.constant 0 : i32
    %c0_i32_1 = arith.constant 0 : i32
    return %c0_i32, %c0_i32_0 : i32, i32
  }
  func.func @transform_2(%arg0: i32) -> (i32, i32) {
    %c0_i32 = arith.constant 0 : i32
    %c0_i32_0 = arith.constant 0 : i32
    %c0_i32_1 = arith.constant 0 : i32
    return %c0_i32, %c0_i32_0 : i32, i32
  }
  func.func @transform_3(%arg0: i32) -> (i32, i32) {
    %c0_i32 = arith.constant 0 : i32
    %c0_i32_0 = arith.constant 0 : i32
    %c0_i32_1 = arith.constant 0 : i32
    return %c0_i32, %c0_i32_0 : i32, i32
  }
  func.func @transform_4(%arg0: i32) -> (i32, i32) {
    %c0_i32 = arith.constant 0 : i32
    %c0_i32_0 = arith.constant 0 : i32
    %c0_i32_1 = arith.constant 0 : i32
    return %c0_i32, %c0_i32_0 : i32, i32
  }
  func.func @transform_5(%arg0: i32) -> (i32, i32) {
    %c0_i32 = arith.constant 0 : i32
    %c0_i32_0 = arith.constant 0 : i32
    return %arg0, %c0_i32 : i32, i32
  }
  func.func @transform_6(%arg0: i32) -> (i32, i32) {
    %c0_i32 = arith.constant 0 : i32
    %c0_i32_0 = arith.constant 0 : i32
    return %arg0, %c0_i32 : i32, i32
  }
}

</mosaic_0001>

<bundles_post_ra>
// kernel: tpu_custom_call.1
= control target key start
LH: loop header
LB: loop body
LE: loop exit
PB: predicated region body
PF: predicated region fallthrough
CT: control target
= control target key end

     0   :  { %12 = vsyncpa [#allocation3], 0  ;;  %s1870_s0 = inlined_call_operand.hbm [shape: bf16[256,128], index: 0, kind: input, shape index: {}]   ;;  %s1871_s1 = inlined_call_operand.hbm [shape: bf16[128,128], index: 1, kind: input, shape index: {}]   ;;  %s1872_s2 = inlined_call_operand.vmem [shape: f32[1,128], index: 2, kind: input, shape index: {}]   ;;  %s1873_s3 = inlined_call_operand.hbm [shape: bf16[128,128], index: 3, kind: input, shape index: {}]   ;;  %s1874_s4 = inlined_call_operand.vmem [shape: f32[1,128], index: 4, kind: input, shape index: {}]   ;;  %s1875_s5 = inlined_call_operand.hbm [shape: bf16[256,128], index: 5, kind: output, shape index: {0}]   ;;  %s1876_s6 = inlined_call_operand.hbm [shape: bf16[256,128], index: 6, kind: output, shape index: {1}]  }
   0x1   :  { %13 = vsyncpa [#allocation6], 0 }
   0x2   :  { %14 = vsyncpa [#allocation4], 0 }
   0x3   :  { %15 = vsyncpa [#allocation10], 0  ;;  %s1665_s21 = smov [#allocation5]   ;;  %s1666_s23 = smov [#allocation2]  }
   0x4   :  { %s33_s22 = sshll.u32 %s1665_s21, 4  ;;  %s21_s24 = sshll.u32 %s1666_s23, 4  ;;  %s34_s22 = int_to_ptr.vmem [resolvable:$true] %s33_s22  ;;  %s1707_s24 = int_to_ptr.vmem [resolvable:$true] %s21_s24 }
   0x5   :  { %s1547_s27 = scalar_lea.hbm %s1871_s1, 1024 }
   0x6   :  { %p1548_p0 = scmp.ne.s32.totalorder %s1871_s1, %s1547_s27  ;;  %p1551_p1 = scmp.lt.u32.totalorder %s1547_s27, %s1871_s1 }
   0x8   :  { %p1553_p2 = pnand %p1551_p1, %p1548_p0 }
   0xa   :  { %1556 = shalt.err (!%p1553_p2)
}
   0xb   :  { %s1557_s8 = scalar_lea.vmem %s34_s22, 1024  ;;  %p1562_p4 = scmp.lt.s32.totalorder %s34_s22, %s34_s22 }
   0xc   :  { %p1558_p3 = scmp.ne.s32.totalorder %s34_s22, %s1557_s8  ;;  %p1563_p5 = scmp.lt.s32.totalorder %s1557_s8, %s1557_s8 }
   0xe   :  { %p1564_p6 = por %p1563_p5, %p1562_p4 }
  0x10   :  { %p1565_p7 = pnand %p1564_p6, %p1558_p3 }
  0x12   :  { %1568 = shalt.err (!%p1565_p7)
}
  0x13   :  { %s1667_s9 = smov 64   ;;  %s1668_s10 = smov 4  }
  0x14   :  { %39 = dma.hbm_to_vmem [thread:$0]  %s1871_s1, 1024, %s34_s22, [#allocation6], %s1667_s9, %s1667_s9, %s1668_s10  }
  0x15   :  { %s1569_s15 = scalar_lea.hbm %s1870_s0, 2048 }
  0x16   :  { %p1570_p8 = scmp.ne.s32.totalorder %s1870_s0, %s1569_s15  ;;  %p1573_p9 = scmp.lt.u32.totalorder %s1569_s15, %s1870_s0 }
  0x18   :  { %p1575_p10 = pnand %p1573_p9, %p1570_p8 }
  0x1a   :  { %1578 = shalt.err (!%p1575_p10)
}
  0x1b   :  { %s1579_s20 = scalar_lea.vmem %s1707_s24, 2048  ;;  %p1584_p12 = scmp.lt.s32.totalorder %s1707_s24, %s1707_s24 }
  0x1c   :  { %p1580_p11 = scmp.ne.s32.totalorder %s1707_s24, %s1579_s20  ;;  %p1585_p13 = scmp.lt.s32.totalorder %s1579_s20, %s1579_s20 }
  0x1e   :  { %p1586_p0 = por %p1585_p13, %p1584_p12 }
  0x20   :  { %p1587_p1 = pnand %p1586_p0, %p1580_p11 }
  0x22   :  { %1590 = shalt.err (!%p1587_p1)
}
  0x23   :  { %27 = dma.hbm_to_vmem [thread:$0]  %s1870_s0, 2048, %s1707_s24, [#allocation3], %s1667_s9, %s1667_s9, %s1668_s10  }
  0x24   :  { %s1669_s22 = smov [#allocation7]   ;;  %s1591_s27 = scalar_lea.hbm %s1873_s3, 1024 }
  0x25   :  { %s47_s23 = sshll.u32 %s1669_s22, 4  ;;  %p1592_p2 = scmp.ne.s32.totalorder %s1873_s3, %s1591_s27  ;;  %s48_s23 = int_to_ptr.vmem [resolvable:$true] %s47_s23 }
  0x26   :  { %p1595_p3 = scmp.lt.u32.totalorder %s1591_s27, %s1873_s3 }
  0x28   :  { %p1597_p4 = pnand %p1595_p3, %p1592_p2 }
  0x2a   :  { %1600 = shalt.err (!%p1597_p4)
}
  0x2b   :  { %s1601_s8 = scalar_lea.vmem %s48_s23, 1024  ;;  %p1606_p6 = scmp.lt.s32.totalorder %s48_s23, %s48_s23 }
  0x2c   :  { %p1602_p5 = scmp.ne.s32.totalorder %s48_s23, %s1601_s8  ;;  %p1607_p7 = scmp.lt.s32.totalorder %s1601_s8, %s1601_s8 }
  0x2e   :  { %p1608_p8 = por %p1607_p7, %p1606_p6 }
  0x30   :  { %p1609_p9 = pnand %p1608_p8, %p1602_p5 }
  0x32   :  { %1612 = shalt.err (!%p1609_p9)
}
  0x33   :  { %53 = dma.hbm_to_vmem [thread:$0]  %s1873_s3, 1024, %s48_s23, [#allocation6], %s1667_s9, %s1667_s9, %s1668_s10  }
  0x34   :  { %1657 = dma.done.wait [#allocation3], 2048  }
  0x35   :  { %1658 = vsyncadd [#allocation3], 4294965248 }
  0x36   :  { %1659 = dma.done.wait [#allocation6], 2048  }
  0x37   :  { %1660 = vsyncadd [#allocation6], 4294965248  ;;  %v1515_v0 = vld [vmem:[#allocation5] sm:$0xff]   ;;  %v1517_v2 = vld [vmem:[#allocation5 + $0x8] sm:$0xff]   ;;  %s1671_s14 = smov [#allocation9]  }
  0x38   :  { %v1516_v1 = vld [vmem:[#allocation7] sm:$0xff]   ;;  %1412 = vmatprep.subr.bf16.mxu0 %v1515_v0  ;;  %v1518_v3 = vld [vmem:[#allocation7 + $0x8] sm:$0xff]   ;;  %v1519_v4 = vld [vmem:[#allocation5 + $0x10] sm:$0xff]   ;;  %s995_s15 = sshll.u32 %s1671_s14, 4  ;;  %s1833_s15 = int_to_ptr.vmem [resolvable:$true] %s995_s15 }
  0x39   :  { %1460 = vmatprep.subr.bf16.mxu1 %v1516_v1  ;;  %1413 = vmatpush3.bf16.msra.mxu0 %v1515_v0  ;;  %v1520_v5 = vld [vmem:[#allocation7 + $0x10] sm:$0xff]   ;;  %v1521_v6 = vld [vmem:[#allocation5 + $0x18] sm:$0xff]   ;;  %v1523_v8 = vld [vmem:[#allocation5 + $0x20] sm:$0xff]  }
  0x3a   :  { %1461 = vmatpush3.bf16.msra.mxu1 %v1516_v1  ;;  %1414 = vmatprep.subr.bf16.mxu0 %v1517_v2  ;;  %v1522_v7 = vld [vmem:[#allocation7 + $0x18] sm:$0xff]   ;;  %v1524_v9 = vld [vmem:[#allocation7 + $0x20] sm:$0xff]   ;;  %v1525_v10 = vld [vmem:[#allocation5 + $0x28] sm:$0xff]  }
  0x3b   :  { %1462 = vmatprep.subr.bf16.mxu1 %v1518_v3  ;;  %v1531_v11 = vld [vmem:[#allocation2] sm:$0xff]   ;;  %v1526_v12 = vld [vmem:[#allocation7 + $0x28] sm:$0xff]   ;;  %v1527_v13 = vld [vmem:[#allocation5 + $0x30] sm:$0xff]  }
  0x3c   :  { %1428 = vmatprep.mubr.bf16.mxu0 %v1531_v11  ;;  %1476 = vmatprep.mubr.bf16.mxu1 %v1531_v11  ;;  %v1528_v14 = vld [vmem:[#allocation7 + $0x30] sm:$0xff]   ;;  %v1529_v15 = vld [vmem:[#allocation5 + $0x38] sm:$0xff]   ;;  %v1532_v17 = vld [vmem:[#allocation2 + $0x8] sm:$0xff]  }
  0x3d   :  { %1415 = vmatpush3.bf16.msra.mxu0 %v1517_v2  ;;  %v1530_v16 = vld [vmem:[#allocation7 + $0x38] sm:$0xff]   ;;  %v1533_v18 = vld [vmem:[#allocation2 + $0x10] sm:$0xff]   ;;  %v1535_v20 = vld [vmem:[#allocation2 + $0x20] sm:$0xff]  }
  0x3e   :  { %1463 = vmatpush3.bf16.msra.mxu1 %v1518_v3  ;;  %1416 = vmatprep.subr.bf16.mxu0 %v1519_v4  ;;  %v1534_v19 = vld [vmem:[#allocation2 + $0x18] sm:$0xff]   ;;  %v1536_v21 = vld [vmem:[#allocation2 + $0x28] sm:$0xff]   ;;  %v1537_v22 = vld [vmem:[#allocation2 + $0x30] sm:$0xff]  }
  0x3f   :  { %1464 = vmatprep.subr.bf16.mxu1 %v1520_v5  ;;  %v1538_v23 = vld [vmem:[#allocation2 + $0x38] sm:$0xff]   ;;  %v1539_v24 = vld [vmem:[#allocation2 + $0x40] sm:$0xff]   ;;  %v1540_v25 = vld [vmem:[#allocation2 + $0x48] sm:$0xff]  }
  0x40   :  { %v1541_v26 = vld [vmem:[#allocation2 + $0x50] sm:$0xff]   ;;  %v1542_v27 = vld [vmem:[#allocation2 + $0x58] sm:$0xff]   ;;  %v1543_v28 = vld [vmem:[#allocation2 + $0x60] sm:$0xff]  }
  0x41   :  { %1417 = vmatpush3.bf16.msra.mxu0 %v1519_v4  ;;  %v1544_v29 = vld [vmem:[#allocation2 + $0x68] sm:$0xff]   ;;  %v1545_v30 = vld [vmem:[#allocation2 + $0x70] sm:$0xff]   ;;  %v1546_v31 = vld [vmem:[#allocation2 + $0x78] sm:$0xff]  }
  0x42   :  { %1465 = vmatpush3.bf16.msra.mxu1 %v1520_v5  ;;  %1418 = vmatprep.subr.bf16.mxu0 %v1521_v6  ;;  %v1762_v33 = vld [vmem:[%s1872_s2] ss:$0 sm:$0xff]  ;;  %s1670_s2 = smov [#allocation8]  }
  0x43   :  { %1466 = vmatprep.subr.bf16.mxu1 %v1522_v7  ;;  %v1767_v35 = vld [vmem:[%s1874_s4] ss:$0 sm:$0xff]  ;;  %s983_s4 = sshll.u32 %s1670_s2, 4  ;;  %s984_s4 = int_to_ptr.vmem [resolvable:$true] %s983_s4 }
  0x44   :  { %s1613_s16 = scalar_lea.vmem %s984_s4, 2048  ;;  %p1618_p11 = scmp.lt.s32.totalorder %s984_s4, %s984_s4 }
  0x45   :  { %1419 = vmatpush3.bf16.msra.mxu0 %v1521_v6  ;;  %p1614_p10 = scmp.ne.s32.totalorder %s984_s4, %s1613_s16  ;;  %p1619_p12 = scmp.lt.s32.totalorder %s1613_s16, %s1613_s16 }
  0x46   :  { %1467 = vmatpush3.bf16.msra.mxu1 %v1522_v7  ;;  %1420 = vmatprep.subr.bf16.mxu0 %v1523_v8 }
  0x47   :  { %1468 = vmatprep.subr.bf16.mxu1 %v1524_v9  ;;  %p1620_p13 = por %p1619_p12, %p1618_p11 }
  0x49   :  { %1421 = vmatpush3.bf16.msra.mxu0 %v1523_v8  ;;  %p1621_p0 = pnand %p1620_p13, %p1614_p10 }
  0x4a   :  { %1469 = vmatpush3.bf16.msra.mxu1 %v1524_v9  ;;  %1422 = vmatprep.subr.bf16.mxu0 %v1525_v10 }
  0x4b   :  { %1470 = vmatprep.subr.bf16.mxu1 %v1526_v12 }
  0x4d   :  { %1423 = vmatpush3.bf16.msra.mxu0 %v1525_v10 }
  0x4e   :  { %1471 = vmatpush3.bf16.msra.mxu1 %v1526_v12  ;;  %1424 = vmatprep.subr.bf16.mxu0 %v1527_v13 }
  0x4f   :  { %1472 = vmatprep.subr.bf16.mxu1 %v1528_v14 }
  0x51   :  { %1425 = vmatpush3.bf16.msra.mxu0 %v1527_v13 }
  0x52   :  { %1473 = vmatpush3.bf16.msra.mxu1 %v1528_v14  ;;  %1426 = vmatprep.subr.bf16.mxu0 %v1529_v15 }
  0x53   :  { %1474 = vmatprep.subr.bf16.mxu1 %v1530_v16 }
  0x55   :  { %1427 = vmatpush3.bf16.msra.mxu0 %v1529_v15 }
  0x56   :  { %1475 = vmatpush3.bf16.msra.mxu1 %v1530_v16 }
  0x58   :  { %1429 = vmatmul.mubr.bf16.vlgmr.msra.gmra.mrb[0].mxu0 %v1532_v17 }
  0x59   :  { %1477 = vmatmul.mubr.bf16.vlgmr.msra.gmra.mrb[0].mxu1 %v1532_v17  ;;  %1432 = vmatprep.mubr.bf16.mxu0 %v1533_v18 }
  0x5a   :  { %1480 = vmatprep.mubr.bf16.mxu1 %v1533_v18 }
  0x60   :  { %1433 = vmatmul.mubr.bf16.gmra.mrb[4].mxu0 %v1534_v19 }
  0x61   :  { %1481 = vmatmul.mubr.bf16.gmra.mrb[4].mxu1 %v1534_v19  ;;  %1436 = vmatprep.mubr.bf16.mxu0 %v1535_v20 }
  0x62   :  { %1484 = vmatprep.mubr.bf16.mxu1 %v1535_v20 }
  0x68   :  { %1437 = vmatmul.mubr.bf16.gmra.mrb[8].mxu0 %v1536_v21 }
  0x69   :  { %1485 = vmatmul.mubr.bf16.gmra.mrb[8].mxu1 %v1536_v21  ;;  %1440 = vmatprep.mubr.bf16.mxu0 %v1537_v22 }
  0x6a   :  { %1488 = vmatprep.mubr.bf16.mxu1 %v1537_v22 }
  0x70   :  { %1441 = vmatmul.mubr.bf16.gmra.mrb[12].mxu0 %v1538_v23 }
  0x71   :  { %1489 = vmatmul.mubr.bf16.gmra.mrb[12].mxu1 %v1538_v23  ;;  %1444 = vmatprep.mubr.bf16.mxu0 %v1539_v24 }
  0x72   :  { %1492 = vmatprep.mubr.bf16.mxu1 %v1539_v24 }
  0x78   :  { %1445 = vmatmul.mubr.bf16.gmra.mrb[16].mxu0 %v1540_v25 }
  0x79   :  { %1493 = vmatmul.mubr.bf16.gmra.mrb[16].mxu1 %v1540_v25  ;;  %1448 = vmatprep.mubr.bf16.mxu0 %v1541_v26 }
  0x7a   :  { %1496 = vmatprep.mubr.bf16.mxu1 %v1541_v26 }
  0x80   :  { %1449 = vmatmul.mubr.bf16.gmra.mrb[20].mxu0 %v1542_v27 }
  0x81   :  { %1497 = vmatmul.mubr.bf16.gmra.mrb[20].mxu1 %v1542_v27  ;;  %1452 = vmatprep.mubr.bf16.mxu0 %v1543_v28 }
  0x82   :  { %1500 = vmatprep.mubr.bf16.mxu1 %v1543_v28 }
  0x88   :  { %1453 = vmatmul.mubr.bf16.gmra.mrb[24].mxu0 %v1544_v29 }
  0x89   :  { %1501 = vmatmul.mubr.bf16.gmra.mrb[24].mxu1 %v1544_v29  ;;  %1456 = vmatprep.mubr.bf16.mxu0 %v1545_v30 }
  0x8a   :  { %1504 = vmatprep.mubr.bf16.mxu1 %v1545_v30 }
  0x90   :  { %1457 = vmatmul.mubr.bf16.gmra.mrb[28].mxu0 %v1546_v31 }
  0x91   :  { %1505 = vmatmul.mubr.bf16.gmra.mrb[28].mxu1 %v1546_v31 }
 0x12b   :  { %v1430_v32 = vpop.f32.mrb[0].mxu0 }
 0x12c   :  { %v1478_v34 = vpop.f32.mrb[0].mxu1  ;;  %v299_v36 = vpop.f32.mrb[1].mxu0  ;;  %v308_v39 = vadd.f32 %v1430_v32, %v1762_v33 }
 0x12d   :  { %v531_v37 = vpop.f32.mrb[1].mxu1  ;;  %v1431_v38 = vpop.f32.mrb[2].mxu0  ;;  %v540_v43 = vadd.f32 %v1478_v34, %v1767_v35  ;;  %v300_v44 = vadd.f32 %v1762_v33, %v299_v36 }
 0x12e   :  { %v311_v40 = vadd.f32 %v1431_v38, %v1762_v33  ;;  %v1479_v41 = vpop.f32.mrb[2].mxu1  ;;  %v302_v42 = vpop.f32.mrb[3].mxu0  ;;  %v532_v48 = vadd.f32 %v1767_v35, %v531_v37 }
 0x12f   :  { %v543_v45 = vadd.f32 %v1479_v41, %v1767_v35  ;;  %v303_v46 = vadd.f32 %v1762_v33, %v302_v42  ;;  %v534_v47 = vpop.f32.mrb[3].mxu1 }
 0x130   :  { %v1182_v49 = vpack.c.bf16 %v311_v40, %v308_v39  ;;  %v535_v50 = vadd.f32 %v1767_v35, %v534_v47 }
 0x131   :  { %v1262_v51 = vpack.c.bf16 %v543_v45, %v540_v43  ;;  %v1177_v52 = vpack.c.bf16 %v303_v46, %v300_v44 }
 0x132   :  { %1334 = vst [vmem:[#allocation8 + $0x8] sm:$0xff] %v1182_v49   ;;  %v1257_v53 = vpack.c.bf16 %v535_v50, %v532_v48 }
 0x133   :  { %1349 = vst [vmem:[#allocation9 + $0x8] sm:$0xff] %v1262_v51   ;;  %1178 = vst [vmem:[#allocation8] sm:$0xff] %v1177_v52   ;;  %v1434_v54 = vpop.f32.mrb[4].mxu0 }
 0x134   :  { %1258 = vst [vmem:[#allocation9] sm:$0xff] %v1257_v53   ;;  %v1482_v55 = vpop.f32.mrb[4].mxu1  ;;  %v315_v56 = vpop.f32.mrb[5].mxu0  ;;  %v324_v59 = vadd.f32 %v1434_v54, %v1762_v33 }
 0x135   :  { %v547_v57 = vpop.f32.mrb[5].mxu1  ;;  %v1435_v58 = vpop.f32.mrb[6].mxu0  ;;  %v556_v63 = vadd.f32 %v1482_v55, %v1767_v35  ;;  %v316_v0 = vadd.f32 %v1762_v33, %v315_v56 }
 0x136   :  { %v327_v60 = vadd.f32 %v1435_v58, %v1762_v33  ;;  %v1483_v61 = vpop.f32.mrb[6].mxu1  ;;  %v318_v62 = vpop.f32.mrb[7].mxu0  ;;  %v548_v4 = vadd.f32 %v1767_v35, %v547_v57 }
 0x137   :  { %v559_v1 = vadd.f32 %v1483_v61, %v1767_v35  ;;  %v319_v2 = vadd.f32 %v1762_v33, %v318_v62  ;;  %v550_v3 = vpop.f32.mrb[7].mxu1 }
 0x138   :  { %v1192_v5 = vpack.c.bf16 %v327_v60, %v324_v59  ;;  %v551_v6 = vadd.f32 %v1767_v35, %v550_v3 }
 0x139   :  { %v1272_v7 = vpack.c.bf16 %v559_v1, %v556_v63  ;;  %v1187_v8 = vpack.c.bf16 %v319_v2, %v316_v0 }
 0x13a   :  { %1336 = vst [vmem:[#allocation8 + $0x18] sm:$0xff] %v1192_v5   ;;  %v1267_v9 = vpack.c.bf16 %v551_v6, %v548_v4 }
 0x13b   :  { %1351 = vst [vmem:[#allocation9 + $0x18] sm:$0xff] %v1272_v7   ;;  %1335 = vst [vmem:[#allocation8 + $0x10] sm:$0xff] %v1187_v8   ;;  %v1438_v10 = vpop.f32.mrb[8].mxu0 }
 0x13c   :  { %1350 = vst [vmem:[#allocation9 + $0x10] sm:$0xff] %v1267_v9   ;;  %v1486_v11 = vpop.f32.mrb[8].mxu1  ;;  %v331_v12 = vpop.f32.mrb[9].mxu0  ;;  %v340_v15 = vadd.f32 %v1438_v10, %v1762_v33 }
 0x13d   :  { %v563_v13 = vpop.f32.mrb[9].mxu1  ;;  %v1439_v14 = vpop.f32.mrb[10].mxu0  ;;  %v572_v19 = vadd.f32 %v1486_v11, %v1767_v35  ;;  %v332_v20 = vadd.f32 %v1762_v33, %v331_v12 }
 0x13e   :  { %v343_v16 = vadd.f32 %v1439_v14, %v1762_v33  ;;  %v1487_v17 = vpop.f32.mrb[10].mxu1  ;;  %v334_v18 = vpop.f32.mrb[11].mxu0  ;;  %v564_v24 = vadd.f32 %v1767_v35, %v563_v13 }
 0x13f   :  { %v575_v21 = vadd.f32 %v1487_v17, %v1767_v35  ;;  %v335_v22 = vadd.f32 %v1762_v33, %v334_v18  ;;  %v566_v23 = vpop.f32.mrb[11].mxu1 }
 0x140   :  { %v1202_v25 = vpack.c.bf16 %v343_v16, %v340_v15  ;;  %v567_v26 = vadd.f32 %v1767_v35, %v566_v23 }
 0x141   :  { %v1282_v27 = vpack.c.bf16 %v575_v21, %v572_v19  ;;  %v1197_v28 = vpack.c.bf16 %v335_v22, %v332_v20 }
 0x142   :  { %1338 = vst [vmem:[#allocation8 + $0x28] sm:$0xff] %v1202_v25   ;;  %v1277_v29 = vpack.c.bf16 %v567_v26, %v564_v24 }
 0x143   :  { %1353 = vst [vmem:[#allocation9 + $0x28] sm:$0xff] %v1282_v27   ;;  %1337 = vst [vmem:[#allocation8 + $0x20] sm:$0xff] %v1197_v28   ;;  %v1442_v30 = vpop.f32.mrb[12].mxu0 }
 0x144   :  { %1352 = vst [vmem:[#allocation9 + $0x20] sm:$0xff] %v1277_v29   ;;  %v1490_v31 = vpop.f32.mrb[12].mxu1  ;;  %v347_v32 = vpop.f32.mrb[13].mxu0  ;;  %v356_v37 = vadd.f32 %v1442_v30, %v1762_v33 }
 0x145   :  { %v579_v34 = vpop.f32.mrb[13].mxu1  ;;  %v1443_v36 = vpop.f32.mrb[14].mxu0  ;;  %v588_v41 = vadd.f32 %v1490_v31, %v1767_v35  ;;  %v348_v42 = vadd.f32 %v1762_v33, %v347_v32 }
 0x146   :  { %v359_v38 = vadd.f32 %v1443_v36, %v1762_v33  ;;  %v1491_v39 = vpop.f32.mrb[14].mxu1  ;;  %v350_v40 = vpop.f32.mrb[15].mxu0  ;;  %v580_v46 = vadd.f32 %v1767_v35, %v579_v34 }
 0x147   :  { %v591_v43 = vadd.f32 %v1491_v39, %v1767_v35  ;;  %v351_v44 = vadd.f32 %v1762_v33, %v350_v40  ;;  %v582_v45 = vpop.f32.mrb[15].mxu1 }
 0x148   :  { %v1212_v47 = vpack.c.bf16 %v359_v38, %v356_v37  ;;  %v583_v48 = vadd.f32 %v1767_v35, %v582_v45 }
 0x149   :  { %v1292_v49 = vpack.c.bf16 %v591_v43, %v588_v41  ;;  %v1207_v50 = vpack.c.bf16 %v351_v44, %v348_v42 }
 0x14a   :  { %1340 = vst [vmem:[#allocation8 + $0x38] sm:$0xff] %v1212_v47   ;;  %v1287_v51 = vpack.c.bf16 %v583_v48, %v580_v46 }
 0x14b   :  { %1355 = vst [vmem:[#allocation9 + $0x38] sm:$0xff] %v1292_v49   ;;  %1339 = vst [vmem:[#allocation8 + $0x30] sm:$0xff] %v1207_v50   ;;  %v1446_v52 = vpop.f32.mrb[16].mxu0 }
 0x14c   :  { %1354 = vst [vmem:[#allocation9 + $0x30] sm:$0xff] %v1287_v51   ;;  %v1494_v53 = vpop.f32.mrb[16].mxu1  ;;  %v363_v54 = vpop.f32.mrb[17].mxu0  ;;  %v372_v57 = vadd.f32 %v1446_v52, %v1762_v33 }
 0x14d   :  { %v595_v55 = vpop.f32.mrb[17].mxu1  ;;  %v1447_v56 = vpop.f32.mrb[18].mxu0  ;;  %v604_v61 = vadd.f32 %v1494_v53, %v1767_v35  ;;  %v364_v62 = vadd.f32 %v1762_v33, %v363_v54 }
 0x14e   :  { %v375_v58 = vadd.f32 %v1447_v56, %v1762_v33  ;;  %v1495_v59 = vpop.f32.mrb[18].mxu1  ;;  %v366_v60 = vpop.f32.mrb[19].mxu0  ;;  %v596_v2 = vadd.f32 %v1767_v35, %v595_v55 }
 0x14f   :  { %v607_v63 = vadd.f32 %v1495_v59, %v1767_v35  ;;  %v367_v0 = vadd.f32 %v1762_v33, %v366_v60  ;;  %v598_v1 = vpop.f32.mrb[19].mxu1 }
 0x150   :  { %v1222_v3 = vpack.c.bf16 %v375_v58, %v372_v57  ;;  %v599_v4 = vadd.f32 %v1767_v35, %v598_v1 }
 0x151   :  { %v1302_v5 = vpack.c.bf16 %v607_v63, %v604_v61  ;;  %v1217_v6 = vpack.c.bf16 %v367_v0, %v364_v62 }
 0x152   :  { %1342 = vst [vmem:[#allocation8 + $0x48] sm:$0xff] %v1222_v3   ;;  %v1297_v7 = vpack.c.bf16 %v599_v4, %v596_v2 }
 0x153   :  { %1357 = vst [vmem:[#allocation9 + $0x48] sm:$0xff] %v1302_v5   ;;  %1341 = vst [vmem:[#allocation8 + $0x40] sm:$0xff] %v1217_v6   ;;  %v1450_v8 = vpop.f32.mrb[20].mxu0 }
 0x154   :  { %1356 = vst [vmem:[#allocation9 + $0x40] sm:$0xff] %v1297_v7   ;;  %v1498_v9 = vpop.f32.mrb[20].mxu1  ;;  %v379_v10 = vpop.f32.mrb[21].mxu0  ;;  %v388_v13 = vadd.f32 %v1450_v8, %v1762_v33 }
 0x155   :  { %v611_v11 = vpop.f32.mrb[21].mxu1  ;;  %v1451_v12 = vpop.f32.mrb[22].mxu0  ;;  %v620_v17 = vadd.f32 %v1498_v9, %v1767_v35  ;;  %v380_v18 = vadd.f32 %v1762_v33, %v379_v10 }
 0x156   :  { %v391_v14 = vadd.f32 %v1451_v12, %v1762_v33  ;;  %v1499_v15 = vpop.f32.mrb[22].mxu1  ;;  %v382_v16 = vpop.f32.mrb[23].mxu0  ;;  %v612_v22 = vadd.f32 %v1767_v35, %v611_v11 }
 0x157   :  { %v623_v19 = vadd.f32 %v1499_v15, %v1767_v35  ;;  %v383_v20 = vadd.f32 %v1762_v33, %v382_v16  ;;  %v614_v21 = vpop.f32.mrb[23].mxu1 }
 0x158   :  { %v1232_v23 = vpack.c.bf16 %v391_v14, %v388_v13  ;;  %v615_v24 = vadd.f32 %v1767_v35, %v614_v21 }
 0x159   :  { %v1312_v25 = vpack.c.bf16 %v623_v19, %v620_v17  ;;  %v1227_v26 = vpack.c.bf16 %v383_v20, %v380_v18 }
 0x15a   :  { %1344 = vst [vmem:[#allocation8 + $0x58] sm:$0xff] %v1232_v23   ;;  %v1307_v27 = vpack.c.bf16 %v615_v24, %v612_v22 }
 0x15b   :  { %1359 = vst [vmem:[#allocation9 + $0x58] sm:$0xff] %v1312_v25   ;;  %1343 = vst [vmem:[#allocation8 + $0x50] sm:$0xff] %v1227_v26   ;;  %v1454_v28 = vpop.f32.mrb[24].mxu0 }
 0x15c   :  { %1358 = vst [vmem:[#allocation9 + $0x50] sm:$0xff] %v1307_v27   ;;  %v1502_v29 = vpop.f32.mrb[24].mxu1  ;;  %v395_v30 = vpop.f32.mrb[25].mxu0  ;;  %v404_v34 = vadd.f32 %v1454_v28, %v1762_v33 }
 0x15d   :  { %v627_v31 = vpop.f32.mrb[25].mxu1  ;;  %v1455_v32 = vpop.f32.mrb[26].mxu0  ;;  %v636_v39 = vadd.f32 %v1502_v29, %v1767_v35  ;;  %v396_v40 = vadd.f32 %v1762_v33, %v395_v30 }
 0x15e   :  { %v407_v36 = vadd.f32 %v1455_v32, %v1762_v33  ;;  %v1503_v37 = vpop.f32.mrb[26].mxu1  ;;  %v398_v38 = vpop.f32.mrb[27].mxu0  ;;  %v628_v44 = vadd.f32 %v1767_v35, %v627_v31 }
 0x15f   :  { %v639_v41 = vadd.f32 %v1503_v37, %v1767_v35  ;;  %v399_v42 = vadd.f32 %v1762_v33, %v398_v38  ;;  %v630_v43 = vpop.f32.mrb[27].mxu1 }
 0x160   :  { %v1242_v45 = vpack.c.bf16 %v407_v36, %v404_v34  ;;  %v631_v46 = vadd.f32 %v1767_v35, %v630_v43 }
 0x161   :  { %v1322_v47 = vpack.c.bf16 %v639_v41, %v636_v39  ;;  %v1237_v48 = vpack.c.bf16 %v399_v42, %v396_v40 }
 0x162   :  { %1346 = vst [vmem:[#allocation8 + $0x68] sm:$0xff] %v1242_v45   ;;  %v1317_v49 = vpack.c.bf16 %v631_v46, %v628_v44 }
 0x163   :  { %1361 = vst [vmem:[#allocation9 + $0x68] sm:$0xff] %v1322_v47   ;;  %1345 = vst [vmem:[#allocation8 + $0x60] sm:$0xff] %v1237_v48   ;;  %v1458_v50 = vpop.f32.mrb[28].mxu0 }
 0x164   :  { %1360 = vst [vmem:[#allocation9 + $0x60] sm:$0xff] %v1317_v49   ;;  %v1506_v51 = vpop.f32.mrb[28].mxu1  ;;  %v411_v52 = vpop.f32.mrb[29].mxu0  ;;  %v420_v55 = vadd.f32 %v1458_v50, %v1762_v33 }
 0x165   :  { %v643_v53 = vpop.f32.mrb[29].mxu1  ;;  %v1459_v54 = vpop.f32.mrb[30].mxu0  ;;  %v652_v59 = vadd.f32 %v1506_v51, %v1767_v35  ;;  %v412_v60 = vadd.f32 %v1762_v33, %v411_v52 }
 0x166   :  { %v423_v56 = vadd.f32 %v1459_v54, %v1762_v33  ;;  %v1507_v57 = vpop.f32.mrb[30].mxu1  ;;  %v414_v58 = vpop.f32.mrb[31].mxu0  ;;  %v644_v0 = vadd.f32 %v1767_v35, %v643_v53 }
 0x167   :  { %v655_v61 = vadd.f32 %v1507_v57, %v1767_v35  ;;  %v415_v62 = vadd.f32 %v1762_v33, %v414_v58  ;;  %v646_v63 = vpop.f32.mrb[31].mxu1 }
 0x168   :  { %v1252_v1 = vpack.c.bf16 %v423_v56, %v420_v55  ;;  %v647_v2 = vadd.f32 %v1767_v35, %v646_v63 }
 0x169   :  { %v1332_v3 = vpack.c.bf16 %v655_v61, %v652_v59  ;;  %v1247_v4 = vpack.c.bf16 %v415_v62, %v412_v60 }
 0x16a   :  { %1348 = vst [vmem:[#allocation8 + $0x78] sm:$0xff] %v1252_v1   ;;  %v1327_v5 = vpack.c.bf16 %v647_v2, %v644_v0 }
 0x16b   :  { %1363 = vst [vmem:[#allocation9 + $0x78] sm:$0xff] %v1332_v3   ;;  %1347 = vst [vmem:[#allocation8 + $0x70] sm:$0xff] %v1247_v4  }
 0x16c   :  { %1362 = vst [vmem:[#allocation9 + $0x70] sm:$0xff] %v1327_v5  }
 0x16d   :  { %1624 = shalt.err (!%p1621_p0)
}
 0x16e   :  { %s1625_s19 = scalar_lea.hbm %s1875_s5, 2048 }
 0x16f   :  { %p1626_p1 = scmp.ne.s32.totalorder %s1875_s5, %s1625_s19  ;;  %p1629_p2 = scmp.lt.u32.totalorder %s1625_s19, %s1875_s5 }
 0x171   :  { %p1631_p3 = pnand %p1629_p2, %p1626_p1 }
 0x173   :  { %1634 = shalt.err (!%p1631_p3)
}
 0x174   :  { %989 = dma.vmem_to_hbm [thread:$0]  %s984_s4, 2048, %s1875_s5, [#allocation4], %s1667_s9, %s1667_s9, %s1668_s10  }
 0x175   :  { %s1635_s26 = scalar_lea.vmem %s1833_s15, 2048  ;;  %p1640_p5 = scmp.lt.s32.totalorder %s1833_s15, %s1833_s15 }
 0x176   :  { %p1636_p4 = scmp.ne.s32.totalorder %s1833_s15, %s1635_s26  ;;  %p1641_p6 = scmp.lt.s32.totalorder %s1635_s26, %s1635_s26 }
 0x178   :  { %p1642_p7 = por %p1641_p6, %p1640_p5 }
 0x17a   :  { %p1643_p8 = pnand %p1642_p7, %p1636_p4 }
 0x17c   :  { %1646 = shalt.err (!%p1643_p8)
}
 0x17d   :  { %s1647_s29 = scalar_lea.hbm %s1876_s6, 2048 }
 0x17e   :  { %p1648_p9 = scmp.ne.s32.totalorder %s1876_s6, %s1647_s29  ;;  %p1651_p10 = scmp.lt.u32.totalorder %s1647_s29, %s1876_s6 }
 0x180   :  { %p1653_p11 = pnand %p1651_p10, %p1648_p9 }
 0x182   :  { %1656 = shalt.err (!%p1653_p11)
}
 0x183   :  { %1001 = dma.vmem_to_hbm [thread:$0]  %s1833_s15, 2048, %s1876_s6, [#allocation10], %s1667_s9, %s1667_s9, %s1668_s10  }
 0x184   :  { %1661 = dma.done.wait [#allocation4], 2048  }
 0x185   :  { %1662 = vsyncadd [#allocation4], 4294965248 }
 0x186   :  { %1663 = dma.done.wait [#allocation10], 2048  }
 0x187   :  { %1664 = vsyncadd [#allocation10], 4294965248 }
 0x188   :  { %1008 = vsyncpa [#allocation3], 1 }
 0x189   :  { %1009 = vsyncpa [#allocation6], 1 }
 0x18a   :  { %1010 = vsyncpa [#allocation4], 1 }
 0x18b   :  { %1011 = vsyncpa [#allocation10], 1 }

</bundles_post_ra>
